<compile_context>
chip_gen: v5e
topology: v5e:2x2
jax: 0.10.0
libtpu: 0.0.40
codegen_flags: <defaults>
</compile_context>

<pallas_src>
import functools

import jax
import jax.numpy as jnp
from jax import lax
from jax.experimental import pallas as pl
from jax.experimental.pallas import tpu as pltpu


def _round_up(x, m):
    return ((x + m - 1) // m) * m


def _conv_bn_relu6_kernel(x_ref, w_ref, scale_ref, shift_ref, o_ref,
                          *, W, KH, KW, num_col_tiles):
    # x_ref:     (1, C, L)        bf16 - whole padded flattened image (resident)
    # w_ref:     (KH*KW, OCp, C)  bf16 - one (OCp, C) weight slab per conv tap
    # scale_ref: (OCp, 1)         f32  - folded BN scale (0 on padded channels)
    # shift_ref: (OCp, 1)         f32  - folded BN shift (0 on padded channels)
    # o_ref:     (1, OCp, TR)     f32  - output tile (spatial on lanes)
    _, OCp, TR = o_ref.shape
    if num_col_tiles > 1:
        c0 = pl.multiple_of(pl.program_id(1) * TR, 128)
    else:
        c0 = 0  # single column tile per image: every slice start is static

    acc = jnp.zeros((OCp, TR), jnp.float32)
    for kh in range(KH):
        for kw in range(KW):
            # Shifted (C, TR) view of the flattened image for this conv tap.
            rhs = x_ref[0, :, pl.ds(c0 + kh * W + kw, TR)]
            acc = acc + jnp.dot(w_ref[kh * KW + kw], rhs,
                                preferred_element_type=jnp.float32)

    y = acc * scale_ref[...] + shift_ref[...]                  # fused BatchNorm
    o_ref[0] = jnp.clip(y, 0.0, 6.0).astype(o_ref.dtype)       # ReLU6


def basic_conv2d(x_nchw, conv_w, conv_b, bn_gamma, bn_beta, bn_mean, bn_var,
                 *, eps=1e-5, tm=512):
    """Conv2d(kernel, stride=1, pad=0, bias=True) + BatchNorm2d(eval) + ReLU6."""
    N, C, H, W = x_nchw.shape
    OC, _, KH, KW = conv_w.shape
    OH, OW = H - KH + 1, W - KW + 1

    OCp = _round_up(OC, 8)               # out-channels on sublanes: pad to 8

    # "Full-width" output columns per image (ow runs over W; junk cols sliced).
    M_img = OH * W
    TR = min(_round_up(tm, 128), _round_up(M_img, 128))
    M_pad = _round_up(M_img, TR)
    num_col_tiles = M_pad // TR

    # Flattened-image length so every tap slice stays in bounds.
    L = M_pad + (KH - 1) * W + (KW - 1)

    # --- glue (plain JAX): NCHW -> (N, C, H*W) is just a reshape, no transpose.
    x_flat = x_nchw.astype(jnp.bfloat16).reshape(N, C, H * W)
    x_flat = jnp.pad(x_flat, ((0, 0), (0, 0), (0, L - H * W)))

    # weights: (OC, C, KH, KW) -> (KH, KW, OC, C) -> (KH*KW, OCp, C), bf16.
    w_taps = jnp.transpose(conv_w, (2, 3, 0, 1)).reshape(KH * KW, OC, C)
    w_taps = jnp.pad(w_taps, ((0, 0), (0, OCp - OC), (0, 0))).astype(jnp.bfloat16)

    # fold conv bias + BN (eval mode, running stats) into per-channel affine.
    scale = bn_gamma / jnp.sqrt(bn_var + eps)                       # (OC,)
    shift = bn_beta + scale * (conv_b - bn_mean)                    # (OC,)
    scale_p = jnp.pad(scale, (0, OCp - OC)).reshape(OCp, 1).astype(jnp.float32)
    shift_p = jnp.pad(shift, (0, OCp - OC)).reshape(OCp, 1).astype(jnp.float32)

    kernel = functools.partial(_conv_bn_relu6_kernel, W=W, KH=KH, KW=KW,
                               num_col_tiles=num_col_tiles)

    flops = 2 * N * OH * OW * KH * KW * C * OC
    bytes_accessed = (N * C * L * 2 + KH * KW * OCp * C * 2
                      + 2 * OCp * 4 + N * OCp * M_pad * 4)

    out = pl.pallas_call(
        kernel,
        out_shape=jax.ShapeDtypeStruct((N, OCp, M_pad), jnp.float32),
        grid_spec=pltpu.PrefetchScalarGridSpec(
            num_scalar_prefetch=0,
            grid=(N, num_col_tiles),
            in_specs=[
                # full flattened image per n; stays resident across col tiles
                pl.BlockSpec((1, C, L), lambda n, r: (n, 0, 0)),
                pl.BlockSpec((KH * KW, OCp, C), lambda n, r: (0, 0, 0)),
                pl.BlockSpec((OCp, 1), lambda n, r: (0, 0)),
                pl.BlockSpec((OCp, 1), lambda n, r: (0, 0)),
            ],
            out_specs=pl.BlockSpec((1, OCp, TR), lambda n, r: (n, 0, r)),
        ),
        compiler_params=pltpu.CompilerParams(
            dimension_semantics=("parallel", "parallel"),
            vmem_limit_bytes=32 * 1024 * 1024),
        cost_estimate=pl.CostEstimate(flops=flops, transcendentals=0,
                                      bytes_accessed=bytes_accessed),
    )(x_flat, w_taps, scale_p, shift_p)

    # drop padded channels / padded columns / junk width columns -> NCHW
    out = out[:, :OC, :M_img].reshape(N, OC, OH, W)[:, :, :, :OW]
    return out


def _reference(x_nchw, conv_w, conv_b, bn_gamma, bn_beta, bn_mean, bn_var,
               eps=1e-5):
    y = lax.conv_general_dilated(
        x_nchw.astype(jnp.float32), conv_w.astype(jnp.float32),
        window_strides=(1, 1), padding="VALID",
        dimension_numbers=("NCHW", "OIHW", "NCHW"))
    y = y + conv_b.reshape(1, -1, 1, 1)
    scale = bn_gamma / jnp.sqrt(bn_var + eps)
    y = (y - bn_mean.reshape(1, -1, 1, 1)) * scale.reshape(1, -1, 1, 1) \
        + bn_beta.reshape(1, -1, 1, 1)
    return jnp.clip(y, 0.0, 6.0)


if __name__ == "__main__":
    # small shapes consistent with the module: in_channels=4, out_channels=8, k=3
    N, C, H, W = 2, 4, 16, 16
    OC, KH, KW = 8, 3, 3

    key = jax.random.PRNGKey(0)
    kx, kw, kb, kg, kbe, km, kv = jax.random.split(key, 7)

    x = jax.random.normal(kx, (N, C, H, W), dtype=jnp.float32)
    conv_w = jax.random.normal(kw, (OC, C, KH, KW), dtype=jnp.float32) * 0.1
    conv_b = jax.random.normal(kb, (OC,), dtype=jnp.float32) * 0.1
    bn_gamma = 1.0 + 0.1 * jax.random.normal(kg, (OC,), dtype=jnp.float32)
    bn_beta = 0.1 * jax.random.normal(kbe, (OC,), dtype=jnp.float32)
    bn_mean = 0.1 * jax.random.normal(km, (OC,), dtype=jnp.float32)
    bn_var = jnp.abs(jax.random.normal(kv, (OC,), dtype=jnp.float32)) + 0.5

    out = basic_conv2d(x, conv_w, conv_b, bn_gamma, bn_beta, bn_mean, bn_var)
    out = jax.block_until_ready(out)

    ref = _reference(x, conv_w, conv_b, bn_gamma, bn_beta, bn_mean, bn_var)
    assert out.shape == (N, OC, H - KH + 1, W - KW + 1)
    # bf16 MXU operands with f32 accumulation -> loosened tolerance vs f32 ref.
    assert jnp.allclose(out, ref, atol=5e-2, rtol=5e-2)

    print("KERNEL_OK")
</pallas_src>

<mosaic_0001>
module attributes {stable_mosaic.version = 11 : i64} {
  func.func @_conv_bn_relu6_kernel(%arg0: i32, %arg1: i32, %arg2: memref<1x4x290xbf16, #tpu.memory_space<vmem>>, %arg3: memref<9x8x4xbf16, #tpu.memory_space<vmem>>, %arg4: memref<8x1xf32, #tpu.memory_space<vmem>>, %arg5: memref<8x1xf32, #tpu.memory_space<vmem>>, %arg6: memref<1x8x256xf32, #tpu.memory_space<vmem>>) attributes {dimension_semantics = [#tpu.dimension_semantics<parallel>, #tpu.dimension_semantics<parallel>], iteration_bounds = array<i64: 2, 1>, scalar_prefetch = 0 : i64, scratch_operands = 0 : i64, tpu.core_type = #tpu.core_type<tc>, window_params = [{transform_indices = @transform_0, window_bounds = array<i64: 1, 4, 290>}, {pipeline_mode = #tpu.pipeline_mode<synchronous>, transform_indices = @transform_1, window_bounds = array<i64: 9, 8, 4>}, {pipeline_mode = #tpu.pipeline_mode<synchronous>, transform_indices = @transform_2, window_bounds = array<i64: 8, 1>}, {pipeline_mode = #tpu.pipeline_mode<synchronous>, transform_indices = @transform_3, window_bounds = array<i64: 8, 1>}, {transform_indices = @transform_4, window_bounds = array<i64: 1, 8, 256>}]} {
    %cst = arith.constant 0.000000e+00 : f32
    %0 = vector.broadcast %cst : f32 to vector<8x256xf32>
    %c0 = arith.constant 0 : index
    %c0_0 = arith.constant 0 : index
    %c0_1 = arith.constant 0 : index
    %1 = vector.load %arg2[%c0, %c0_0, %c0_1] : memref<1x4x290xbf16, #tpu.memory_space<vmem>>, vector<1x4x256xbf16>
    %2 = vector.shape_cast %1 : vector<1x4x256xbf16> to vector<4x256xbf16>
    %c0_2 = arith.constant 0 : index
    %c0_3 = arith.constant 0 : index
    %c0_4 = arith.constant 0 : index
    %3 = vector.load %arg3[%c0_2, %c0_3, %c0_4] : memref<9x8x4xbf16, #tpu.memory_space<vmem>>, vector<1x8x4xbf16>
    %4 = vector.shape_cast %3 : vector<1x8x4xbf16> to vector<8x4xbf16>
    %cst_5 = arith.constant dense<0.000000e+00> : vector<8x256xf32>
    %5 = tpu.matmul %4, %2, %cst_5 {dimension_numbers = #tpu.dot_dimension_numbers<[1], [0], [0], [1], [0, 0, 1, 1], [], []>} : vector<8x4xbf16>, vector<4x256xbf16>, vector<8x256xf32> -> vector<8x256xf32>
    %6 = arith.addf %0, %5 : vector<8x256xf32>
    %c0_6 = arith.constant 0 : index
    %c0_7 = arith.constant 0 : index
    %c1 = arith.constant 1 : index
    %7 = vector.load %arg2[%c0_6, %c0_7, %c1] : memref<1x4x290xbf16, #tpu.memory_space<vmem>>, vector<1x4x256xbf16>
    %8 = vector.shape_cast %7 : vector<1x4x256xbf16> to vector<4x256xbf16>
    %c1_8 = arith.constant 1 : index
    %c0_9 = arith.constant 0 : index
    %c0_10 = arith.constant 0 : index
    %9 = vector.load %arg3[%c1_8, %c0_9, %c0_10] : memref<9x8x4xbf16, #tpu.memory_space<vmem>>, vector<1x8x4xbf16>
    %10 = vector.shape_cast %9 : vector<1x8x4xbf16> to vector<8x4xbf16>
    %cst_11 = arith.constant dense<0.000000e+00> : vector<8x256xf32>
    %11 = tpu.matmul %10, %8, %cst_11 {dimension_numbers = #tpu.dot_dimension_numbers<[1], [0], [0], [1], [0, 0, 1, 1], [], []>} : vector<8x4xbf16>, vector<4x256xbf16>, vector<8x256xf32> -> vector<8x256xf32>
    %12 = arith.addf %6, %11 : vector<8x256xf32>
    %c0_12 = arith.constant 0 : index
    %c0_13 = arith.constant 0 : index
    %c2 = arith.constant 2 : index
    %13 = vector.load %arg2[%c0_12, %c0_13, %c2] : memref<1x4x290xbf16, #tpu.memory_space<vmem>>, vector<1x4x256xbf16>
    %14 = vector.shape_cast %13 : vector<1x4x256xbf16> to vector<4x256xbf16>
    %c2_14 = arith.constant 2 : index
    %c0_15 = arith.constant 0 : index
    %c0_16 = arith.constant 0 : index
    %15 = vector.load %arg3[%c2_14, %c0_15, %c0_16] : memref<9x8x4xbf16, #tpu.memory_space<vmem>>, vector<1x8x4xbf16>
    %16 = vector.shape_cast %15 : vector<1x8x4xbf16> to vector<8x4xbf16>
    %cst_17 = arith.constant dense<0.000000e+00> : vector<8x256xf32>
    %17 = tpu.matmul %16, %14, %cst_17 {dimension_numbers = #tpu.dot_dimension_numbers<[1], [0], [0], [1], [0, 0, 1, 1], [], []>} : vector<8x4xbf16>, vector<4x256xbf16>, vector<8x256xf32> -> vector<8x256xf32>
    %18 = arith.addf %12, %17 : vector<8x256xf32>
    %c0_18 = arith.constant 0 : index
    %c0_19 = arith.constant 0 : index
    %c16 = arith.constant 16 : index
    %19 = vector.load %arg2[%c0_18, %c0_19, %c16] : memref<1x4x290xbf16, #tpu.memory_space<vmem>>, vector<1x4x256xbf16>
    %20 = vector.shape_cast %19 : vector<1x4x256xbf16> to vector<4x256xbf16>
    %c3 = arith.constant 3 : index
    %c0_20 = arith.constant 0 : index
    %c0_21 = arith.constant 0 : index
    %21 = vector.load %arg3[%c3, %c0_20, %c0_21] : memref<9x8x4xbf16, #tpu.memory_space<vmem>>, vector<1x8x4xbf16>
    %22 = vector.shape_cast %21 : vector<1x8x4xbf16> to vector<8x4xbf16>
    %cst_22 = arith.constant dense<0.000000e+00> : vector<8x256xf32>
    %23 = tpu.matmul %22, %20, %cst_22 {dimension_numbers = #tpu.dot_dimension_numbers<[1], [0], [0], [1], [0, 0, 1, 1], [], []>} : vector<8x4xbf16>, vector<4x256xbf16>, vector<8x256xf32> -> vector<8x256xf32>
    %24 = arith.addf %18, %23 : vector<8x256xf32>
    %c0_23 = arith.constant 0 : index
    %c0_24 = arith.constant 0 : index
    %c17 = arith.constant 17 : index
    %25 = vector.load %arg2[%c0_23, %c0_24, %c17] : memref<1x4x290xbf16, #tpu.memory_space<vmem>>, vector<1x4x256xbf16>
    %26 = vector.shape_cast %25 : vector<1x4x256xbf16> to vector<4x256xbf16>
    %c4 = arith.constant 4 : index
    %c0_25 = arith.constant 0 : index
    %c0_26 = arith.constant 0 : index
    %27 = vector.load %arg3[%c4, %c0_25, %c0_26] : memref<9x8x4xbf16, #tpu.memory_space<vmem>>, vector<1x8x4xbf16>
    %28 = vector.shape_cast %27 : vector<1x8x4xbf16> to vector<8x4xbf16>
    %cst_27 = arith.constant dense<0.000000e+00> : vector<8x256xf32>
    %29 = tpu.matmul %28, %26, %cst_27 {dimension_numbers = #tpu.dot_dimension_numbers<[1], [0], [0], [1], [0, 0, 1, 1], [], []>} : vector<8x4xbf16>, vector<4x256xbf16>, vector<8x256xf32> -> vector<8x256xf32>
    %30 = arith.addf %24, %29 : vector<8x256xf32>
    %c0_28 = arith.constant 0 : index
    %c0_29 = arith.constant 0 : index
    %c18 = arith.constant 18 : index
    %31 = vector.load %arg2[%c0_28, %c0_29, %c18] : memref<1x4x290xbf16, #tpu.memory_space<vmem>>, vector<1x4x256xbf16>
    %32 = vector.shape_cast %31 : vector<1x4x256xbf16> to vector<4x256xbf16>
    %c5 = arith.constant 5 : index
    %c0_30 = arith.constant 0 : index
    %c0_31 = arith.constant 0 : index
    %33 = vector.load %arg3[%c5, %c0_30, %c0_31] : memref<9x8x4xbf16, #tpu.memory_space<vmem>>, vector<1x8x4xbf16>
    %34 = vector.shape_cast %33 : vector<1x8x4xbf16> to vector<8x4xbf16>
    %cst_32 = arith.constant dense<0.000000e+00> : vector<8x256xf32>
    %35 = tpu.matmul %34, %32, %cst_32 {dimension_numbers = #tpu.dot_dimension_numbers<[1], [0], [0], [1], [0, 0, 1, 1], [], []>} : vector<8x4xbf16>, vector<4x256xbf16>, vector<8x256xf32> -> vector<8x256xf32>
    %36 = arith.addf %30, %35 : vector<8x256xf32>
    %c0_33 = arith.constant 0 : index
    %c0_34 = arith.constant 0 : index
    %c32 = arith.constant 32 : index
    %37 = vector.load %arg2[%c0_33, %c0_34, %c32] : memref<1x4x290xbf16, #tpu.memory_space<vmem>>, vector<1x4x256xbf16>
    %38 = vector.shape_cast %37 : vector<1x4x256xbf16> to vector<4x256xbf16>
    %c6 = arith.constant 6 : index
    %c0_35 = arith.constant 0 : index
    %c0_36 = arith.constant 0 : index
    %39 = vector.load %arg3[%c6, %c0_35, %c0_36] : memref<9x8x4xbf16, #tpu.memory_space<vmem>>, vector<1x8x4xbf16>
    %40 = vector.shape_cast %39 : vector<1x8x4xbf16> to vector<8x4xbf16>
    %cst_37 = arith.constant dense<0.000000e+00> : vector<8x256xf32>
    %41 = tpu.matmul %40, %38, %cst_37 {dimension_numbers = #tpu.dot_dimension_numbers<[1], [0], [0], [1], [0, 0, 1, 1], [], []>} : vector<8x4xbf16>, vector<4x256xbf16>, vector<8x256xf32> -> vector<8x256xf32>
    %42 = arith.addf %36, %41 : vector<8x256xf32>
    %c0_38 = arith.constant 0 : index
    %c0_39 = arith.constant 0 : index
    %c33 = arith.constant 33 : index
    %43 = vector.load %arg2[%c0_38, %c0_39, %c33] : memref<1x4x290xbf16, #tpu.memory_space<vmem>>, vector<1x4x256xbf16>
    %44 = vector.shape_cast %43 : vector<1x4x256xbf16> to vector<4x256xbf16>
    %c7 = arith.constant 7 : index
    %c0_40 = arith.constant 0 : index
    %c0_41 = arith.constant 0 : index
    %45 = vector.load %arg3[%c7, %c0_40, %c0_41] : memref<9x8x4xbf16, #tpu.memory_space<vmem>>, vector<1x8x4xbf16>
    %46 = vector.shape_cast %45 : vector<1x8x4xbf16> to vector<8x4xbf16>
    %cst_42 = arith.constant dense<0.000000e+00> : vector<8x256xf32>
    %47 = tpu.matmul %46, %44, %cst_42 {dimension_numbers = #tpu.dot_dimension_numbers<[1], [0], [0], [1], [0, 0, 1, 1], [], []>} : vector<8x4xbf16>, vector<4x256xbf16>, vector<8x256xf32> -> vector<8x256xf32>
    %48 = arith.addf %42, %47 : vector<8x256xf32>
    %c0_43 = arith.constant 0 : index
    %c0_44 = arith.constant 0 : index
    %c34 = arith.constant 34 : index
    %49 = vector.load %arg2[%c0_43, %c0_44, %c34] : memref<1x4x290xbf16, #tpu.memory_space<vmem>>, vector<1x4x256xbf16>
    %50 = vector.shape_cast %49 : vector<1x4x256xbf16> to vector<4x256xbf16>
    %c8 = arith.constant 8 : index
    %c0_45 = arith.constant 0 : index
    %c0_46 = arith.constant 0 : index
    %51 = vector.load %arg3[%c8, %c0_45, %c0_46] : memref<9x8x4xbf16, #tpu.memory_space<vmem>>, vector<1x8x4xbf16>
    %52 = vector.shape_cast %51 : vector<1x8x4xbf16> to vector<8x4xbf16>
    %cst_47 = arith.constant dense<0.000000e+00> : vector<8x256xf32>
    %53 = tpu.matmul %52, %50, %cst_47 {dimension_numbers = #tpu.dot_dimension_numbers<[1], [0], [0], [1], [0, 0, 1, 1], [], []>} : vector<8x4xbf16>, vector<4x256xbf16>, vector<8x256xf32> -> vector<8x256xf32>
    %54 = arith.addf %48, %53 : vector<8x256xf32>
    %c0_48 = arith.constant 0 : index
    %c0_49 = arith.constant 0 : index
    %55 = vector.load %arg4[%c0_48, %c0_49] : memref<8x1xf32, #tpu.memory_space<vmem>>, vector<8x1xf32>
    %56 = vector.broadcast %55 : vector<8x1xf32> to vector<8x256xf32>
    %57 = arith.mulf %54, %56 : vector<8x256xf32>
    %c0_50 = arith.constant 0 : index
    %c0_51 = arith.constant 0 : index
    %58 = vector.load %arg5[%c0_50, %c0_51] : memref<8x1xf32, #tpu.memory_space<vmem>>, vector<8x1xf32>
    %59 = vector.broadcast %58 : vector<8x1xf32> to vector<8x256xf32>
    %60 = arith.addf %57, %59 : vector<8x256xf32>
    %cst_52 = arith.constant 0.000000e+00 : f32
    %cst_53 = arith.constant 6.000000e+00 : f32
    %61 = vector.broadcast %cst_52 : f32 to vector<8x256xf32>
    %62 = arith.maximumf %61, %60 : vector<8x256xf32>
    %63 = vector.broadcast %cst_53 : f32 to vector<8x256xf32>
    %64 = arith.minimumf %63, %62 : vector<8x256xf32>
    %c0_54 = arith.constant 0 : index
    %c0_55 = arith.constant 0 : index
    %c0_56 = arith.constant 0 : index
    %65 = vector.load %arg6[%c0_54, %c0_55, %c0_56] : memref<1x8x256xf32, #tpu.memory_space<vmem>>, vector<1x8x256xf32>
    %66 = vector.shape_cast %65 : vector<1x8x256xf32> to vector<8x256xf32>
    %67 = vector.shape_cast %64 : vector<8x256xf32> to vector<1x8x256xf32>
    tpu.vector_store %arg6[%c0_54, %c0_55, %c0_56], %67 {strides = array<i32>} : memref<1x8x256xf32, #tpu.memory_space<vmem>>, vector<1x8x256xf32>,
    return
  }
  func.func @transform_0(%arg0: i32, %arg1: i32) -> (i32, i32, i32) {
    %c0_i32 = arith.constant 0 : i32
    %c0_i32_0 = arith.constant 0 : i32
    %c0_i32_1 = arith.constant 0 : i32
    return %arg0, %c0_i32, %c0_i32_0 : i32, i32, i32
  }
  func.func @transform_1(%arg0: i32, %arg1: i32) -> (i32, i32, i32) {
    %c0_i32 = arith.constant 0 : i32
    %c0_i32_0 = arith.constant 0 : i32
    %c0_i32_1 = arith.constant 0 : i32
    %c0_i32_2 = arith.constant 0 : i32
    return %c0_i32, %c0_i32_0, %c0_i32_1 : i32, i32, i32
  }
  func.func @transform_2(%arg0: i32, %arg1: i32) -> (i32, i32) {
    %c0_i32 = arith.constant 0 : i32
    %c0_i32_0 = arith.constant 0 : i32
    %c0_i32_1 = arith.constant 0 : i32
    return %c0_i32, %c0_i32_0 : i32, i32
  }
  func.func @transform_3(%arg0: i32, %arg1: i32) -> (i32, i32) {
    %c0_i32 = arith.constant 0 : i32
    %c0_i32_0 = arith.constant 0 : i32
    %c0_i32_1 = arith.constant 0 : i32
    return %c0_i32, %c0_i32_0 : i32, i32
  }
  func.func @transform_4(%arg0: i32, %arg1: i32) -> (i32, i32, i32) {
    %c0_i32 = arith.constant 0 : i32
    %c0_i32_0 = arith.constant 0 : i32
    return %arg0, %c0_i32, %arg1 : i32, i32, i32
  }
}

</mosaic_0001>

<bundles_post_ra>
// kernel: tpu_custom_call.1
= control target key start
LH: loop header
LB: loop body
LE: loop exit
PB: predicated region body
PF: predicated region fallthrough
CT: control target
= control target key end

     0   :  { %9 = vsyncpa [#allocation3], 0  ;;  %s1227_s0 = inlined_call_operand.vmem [shape: bf16[2,4,290], index: 0, kind: input, shape index: {}]   ;;  %s1228_s1 = inlined_call_operand.vmem [shape: bf16[9,8,4], index: 1, kind: input, shape index: {}]   ;;  %s1229_s2 = inlined_call_operand.vmem [shape: f32[8,1], index: 2, kind: input, shape index: {}]   ;;  %s1230_s3 = inlined_call_operand.vmem [shape: f32[8,1], index: 3, kind: input, shape index: {}]   ;;  %s1231_s4 = inlined_call_operand.hbm [shape: f32[2,8,256], index: 4, kind: output, shape index: {}]  }
   0x1   :  { %11 = vsyncpa [#allocation3 + $0x1], 0  ;;  %s1038_s15 = smov 0   ;;  %s1040_s16 = smov 0  }
   0x2   :  { %s1042_s17 = smov 0   ;;  %s1044_s18 = smov 0  }
   0x3   :  { %s1046_s19 = smov 0   ;;  %s1048_s20 = smov 0  }
   0x4 LB: > { %s818_s21 = sadd.s32 4294967295, %s1002_s20   ;;  %s819_s22 = sadd.s32 4294967294, %s1002_s20   ;;  %s1002_s20 = sphi %s1048_s20, %s17_s20   ;;  %s998_s19 = sphi %s1046_s19, %s1238_s19   ;;  %s994_s18 = sphi %s1044_s18, %s1237_s18   ;;  %s990_s17 = sphi %s1042_s17, %s1236_s17   ;;  %s986_s16 = sphi %s1040_s16, %s1235_s16   ;;  %s982_s15 = sphi %s1038_s15, %s1234_s15  }
   0x5   : > { %s29_s23 = sadd.s32 1, %s998_s19  ;;  %s127_s24 = sadd.s32 1, %s990_s17 }
   0x6   : > { %p31_p0 = scmp.ge.s32.totalorder %s29_s23, 2  ;;  %p137_p1 = scmp.ne.s32.totalorder %s990_s17, %s986_s16 }
   0x7   : > { %p138_p2 = scmp.eq.s32.totalorder %s818_s21, 1  ;;  %p143_p3 = scmp.ne.s32.totalorder %s986_s16, %s982_s15 }
   0x8   : > { %s1240_s23 = smov (%p31_p0, %s29_s23), 0  ;;  %p144_p5 = scmp.eq.s32.totalorder %s819_s22, 1 }
   0x9   : > { %p1078_p4 = por %p138_p2, %p137_p1  ;;  %s122_s26 = ssub.s32 %s998_s19, %s1240_s23 }
   0xa   : > { %p822_p6 = scmp.ge.s32.totalorder %s1002_s20, 1  ;;  %p125_p7 = scmp.eq.s32.totalorder %s122_s26, 0 }
   0xb   : > { %p1085_p8 = por %p144_p5, %p143_p3  ;;  %p179_p9 = scmp.lt.s32.totalorder %s1002_s20, 3 }
   0xc   : > { %s1091_s28 = scalar_select %p125_p7, %s990_s17, %s127_s24  }
   0xd   : > { %p180_p10 = pnand %p822_p6, %p179_p9 }
   0xe   : > { %p205_p11 = scmp.lt.s32.totalorder (!%p180_p10), %s994_s18, 1  ;;  %s1004_s8 = smov (!%p180_p10), 127  }
   0xf   : > { %183 = sbr.rel (%p180_p10) target bundleno = 366 (0x16e), region = 36  ;;  %s1005_s9 = smov (!%p180_p10), 126  }
  0x10   : > { %s1006_s10 = smov (!%p180_p10), 112   ;;  %s1007_s11 = smov (!%p180_p10), 111  }
  0x11   : > { %s1008_s12 = smov (!%p180_p10), 110   ;;  %s1009_s13 = smov (!%p180_p10), 96  }
  0x12   : > { %s1010_s14 = smov (!%p180_p10), 95   ;;  %s1011_s21 = smov (!%p180_p10), 94  }
  0x13   : > { %s202_s6 = sand.u32 (!%p180_p10), 1, %s986_s16  }
  0x14   : > { %s206_s29 = scalar_select %p205_p11, %s994_s18, 1  ;;  %vm238_vm0 = vcmask 1041408   ;;  %v213_v37 = vld [vmem:[%s1228_s1] sm:$0xf]  ;;  %vm234_vm1 = vcmask 31744   ;;  %vm325_vm2 = vcmask 1031168  }
  0x15   : > { %vm231_vm3 = vcmask 1039360   ;;  %v825_v49 = vld [vmem:[%s1228_s1 + $0x4] sm:$0xf]  ;;  %vm382_vm4 = vcmask 916480   ;;  %v830_v57 = vld [vmem:[%s1228_s1 + $0x8] sm:$0xf] }
  0x16   : > { %s857_s30 = smul.u32 6, %s206_s29  ;;  %v833_v61 = vld [vmem:[%s1228_s1 + $0xc] sm:$0xf]  ;;  %vm439_vm5 = vcmask 908288   ;;  %vm496_vm6 = vcmask 900096   ;;  %vm553_vm7 = vcmask 785408  }
  0x17   : > { %vm610_vm8 = vcmask 777216   ;;  %vm667_vm9 = vcmask 769024   ;;  %s944_s29 = scalar_lea.hbm %s1231_s4, 32 }
  0x18   : > { %s1098_s7 = scalar_lea.vmem %s1227_s0, %s857_s30 }
  0x19   : > { %v214_v0 = vld [vmem:[%s1098_s7] sm:$0x3f] }
  0x1a   : > { %218 = vst [vmem:[#allocation1] ss:$4 sm:$0xff] %v214_v0  ;;  %v212_v1 = vld [vmem:[%s1098_s7] sm:$0xf] }
  0x1b   : > { %v308_v5 = vld [vmem:[%s1098_s7] sm:$0x3f] }
  0x1c   : > { %v365_v8 = vld [vmem:[%s1098_s7] sm:$0x3f] }
  0x1d   : > { %v422_v12 = vld [vmem:[%s1098_s7] sm:$0x3f] }
  0x1e   : > { %v479_v16 = vld [vmem:[%s1098_s7] sm:$0x3f] }
  0x1f   : > { %v536_v20 = vld [vmem:[%s1098_s7] sm:$0x3f] }
  0x20   : > { %v593_v24 = vld [vmem:[%s1098_s7] sm:$0x3f] }
  0x21   : > { %v219_v2 = vld.sshfl [vmem:[#allocation1] sm:$0xff pattern:$0x73625140]  ;;  %v223_v3 = vld.sshfl [vmem:[#allocation1 + $0x10] sm:$0xff pattern:$0x73625140] }
  0x22   : > { %225 = vrot.lane.b32.xlu0 %v219_v2, %s1004_s8  ;;  %229 = vrot.lane.b32.xlu1 %v223_v3, %s1004_s8  ;;  %v221_v4 = vld.sshfl [vmem:[#allocation1 + $0x8] sm:$0xff pattern:$0x73625140]  ;;  %v650_v28 = vld [vmem:[%s1098_s7] sm:$0x3f]  ;;  %s823_s7 = sshll.u32 %s202_s6, 4 }
  0x23   : > { %272 = vst [vmem:[#allocation1] ss:$4 sm:$0xff] %v212_v1 }
  0x2a   : > { %227 = vrot.lane.b32.xlu0 %v221_v4, %s1004_s8  ;;  %v1103_v6 = vld.sshfl [vmem:[#allocation1] sm:$0xff pattern:$0x73625140]  ;;  %v1105_v7 = vld.sshfl [vmem:[#allocation1 + $0x8] sm:$0xff pattern:$0x73625140] }
  0x2b   : > { %312 = vst [vmem:[#allocation1] ss:$4 sm:$0xff] %v308_v5  ;;  %v278_v35 = vsel %vm238_vm0, %v1103_v6, 0  ;;  %v280_v36 = vsel %vm238_vm0, %v1105_v7, 0  ;;  %v836_v6 = vld [vmem:[%s1228_s1 + $0x10] sm:$0xf] }
  0x2c   : > { %289 = vmatpush.bf16.msra.mxu2 %v278_v35  ;;  %302 = vmatpush.bf16.msra.mxu3 %v280_v36  ;;  %s856_s8 = sshll.u32 %s994_s18, 4  ;;  %s730_s18 = scalar_lea.sflag [#allocation3], %s202_s6 }
  0x2f   : > { %828 = vmatmul.msk.bf16.vlgmr.msra.gmra.mxu2 %vm234_vm1, %v213_v37  ;;  %829 = vmatmul.msk.bf16.vlgmr.msra.gmra.mxu3 %vm234_vm1, %v213_v37 }
  0x32   : > { %v313_v9 = vld.sshfl [vmem:[#allocation1] sm:$0xff pattern:$0x73625140]  ;;  %v315_v10 = vld.sshfl [vmem:[#allocation1 + $0x8] sm:$0xff pattern:$0x73625140] }
  0x33   : > { %319 = vrot.lane.b32.xlu1 %v313_v9, %s1005_s9  ;;  %v317_v11 = vld.sshfl [vmem:[#allocation1 + $0x10] sm:$0xff pattern:$0x73625140]  ;;  %321 = vrot.lane.b32.xlu2 %v315_v10, %s1005_s9 }
  0x34   : > { %369 = vst [vmem:[#allocation1] ss:$4 sm:$0xff] %v365_v8 }
  0x3b   : > { %v374_v13 = vld.sshfl [vmem:[#allocation1 + $0x10] sm:$0xff pattern:$0x73625140]  ;;  %v372_v14 = vld.sshfl [vmem:[#allocation1 + $0x8] sm:$0xff pattern:$0x73625140]  ;;  %323 = vrot.lane.b32.xlu2 %v317_v11, %s1005_s9 }
  0x3c   : > { %378 = vrot.lane.b32.xlu1 %v372_v14, %s1006_s10  ;;  %v370_v15 = vld.sshfl [vmem:[#allocation1] sm:$0xff pattern:$0x73625140] }
  0x3d   : > { %376 = vrot.lane.b32.xlu0 %v370_v15, %s1006_s10  ;;  %426 = vst [vmem:[#allocation1] ss:$4 sm:$0xff] %v422_v12  ;;  %v707_v14 = vld [vmem:[%s1229_s2] sm:$0xff] }
  0x3e   : > { %v715_v15 = vld [vmem:[%s1230_s3] sm:$0xff] }
  0x43   : > { %380 = vrot.lane.b32.xlu2 %v374_v13, %s1006_s10  ;;  %v839_v13 = vld [vmem:[%s1228_s1 + $0x14] sm:$0xf] }
  0x44   : > { %v429_v17 = vld.sshfl [vmem:[#allocation1 + $0x8] sm:$0xff pattern:$0x73625140]  ;;  %v431_v18 = vld.sshfl [vmem:[#allocation1 + $0x10] sm:$0xff pattern:$0x73625140] }
  0x45   : > { %435 = vrot.lane.b32.xlu1 %v429_v17, %s1007_s11  ;;  %v427_v19 = vld.sshfl [vmem:[#allocation1] sm:$0xff pattern:$0x73625140] }
  0x46   : > { %433 = vrot.lane.b32.xlu0 %v427_v19, %s1007_s11  ;;  %483 = vst [vmem:[#allocation1] ss:$4 sm:$0xff] %v479_v16  ;;  %v1012_v16 = vmov 0  }
  0x47   : > { %922 = vset.pattern.permute.xlu0 %v1012_v16  ;;  %923 = vset.pattern.permute.xlu1 %v1012_v16 }
  0x4b   : > { %437 = vrot.lane.b32.xlu2 %v431_v18, %s1007_s11  ;;  %s743_s11 = scalar_lea.hbm %s1231_s4, %s856_s8 }
  0x4d   : > { %v486_v21 = vld.sshfl [vmem:[#allocation1 + $0x8] sm:$0xff pattern:$0x73625140]  ;;  %v488_v22 = vld.sshfl [vmem:[#allocation1 + $0x10] sm:$0xff pattern:$0x73625140] }
  0x4e   : > { %492 = vrot.lane.b32.xlu1 %v486_v21, %s1008_s12  ;;  %v484_v23 = vld.sshfl [vmem:[#allocation1] sm:$0xff pattern:$0x73625140] }
  0x4f   : > { %490 = vrot.lane.b32.xlu0 %v484_v23, %s1008_s12  ;;  %540 = vst [vmem:[#allocation1] ss:$4 sm:$0xff] %v536_v20 }
  0x53   : > { %494 = vrot.lane.b32.xlu2 %v488_v22, %s1008_s12  ;;  %s204_s12 = scalar_lea.vmem [#allocation2], %s823_s7 }
  0x56   : > { %v543_v25 = vld.sshfl [vmem:[#allocation1 + $0x8] sm:$0xff pattern:$0x73625140]  ;;  %v545_v26 = vld.sshfl [vmem:[#allocation1 + $0x10] sm:$0xff pattern:$0x73625140] }
  0x57   : > { %549 = vrot.lane.b32.xlu1 %v543_v25, %s1009_s13  ;;  %v541_v27 = vld.sshfl [vmem:[#allocation1] sm:$0xff pattern:$0x73625140] }
  0x58   : > { %547 = vrot.lane.b32.xlu0 %v541_v27, %s1009_s13  ;;  %597 = vst [vmem:[#allocation1] ss:$4 sm:$0xff] %v593_v24  ;;  %v842_v24 = vld [vmem:[%s1228_s1 + $0x18] sm:$0xf] }
  0x5b   : > { %551 = vrot.lane.b32.xlu2 %v545_v26, %s1009_s13  ;;  %s745_s13 = sshll.u32 %s204_s12, 4  ;;  %s746_s13 = int_to_ptr.vmem [resolvable:$true] %s745_s13 }
  0x5f   : > { %v602_v29 = vld.sshfl [vmem:[#allocation1 + $0x10] sm:$0xff pattern:$0x73625140]  ;;  %v600_v30 = vld.sshfl [vmem:[#allocation1 + $0x8] sm:$0xff pattern:$0x73625140] }
  0x60   : > { %606 = vrot.lane.b32.xlu1 %v600_v30, %s1010_s14  ;;  %v598_v31 = vld.sshfl [vmem:[#allocation1] sm:$0xff pattern:$0x73625140] }
  0x61   : > { %604 = vrot.lane.b32.xlu0 %v598_v31, %s1010_s14  ;;  %654 = vst [vmem:[#allocation1] ss:$4 sm:$0xff] %v650_v28 }
  0x63   : > { %608 = vrot.lane.b32.xlu2 %v602_v29, %s1010_s14  ;;  %s747_s14 = sshll.u32 %s743_s11, 4  ;;  %s748_s14 = int_to_ptr.hbm [resolvable:$true] %s747_s14 }
  0x68   : > { %v657_v32 = vld.sshfl [vmem:[#allocation1 + $0x8] sm:$0xff pattern:$0x73625140]  ;;  %v655_v33 = vld.sshfl [vmem:[#allocation1] sm:$0xff pattern:$0x73625140] }
  0x69   : > { %663 = vrot.lane.b32.xlu1 %v657_v32, %s1011_s21  ;;  %661 = vrot.lane.b32.xlu0 %v655_v33, %s1011_s21  ;;  %v659_v34 = vld.sshfl [vmem:[#allocation1 + $0x10] sm:$0xff pattern:$0x73625140]  ;;  %v845_v32 = vld [vmem:[%s1228_s1 + $0x1c] sm:$0xf] }
  0x6b   : > { %665 = vrot.lane.b32.xlu2 %v659_v34, %s1011_s21  ;;  %s938_s21 = sshra.s32 %s748_s14, 4  ;;  %s939_s21 = int_to_ptr.hbm [resolvable:$true] %s938_s21 }
  0x6c   : > { %s940_s22 = scalar_lea.hbm %s939_s21, 16  ;;  %p945_p1 = scmp.lt.s32.totalorder %s939_s21, %s1231_s4 }
  0x6d   : > { %p941_p12 = scmp.ne.s32.totalorder %s939_s21, %s940_s22  ;;  %p946_p2 = scmp.lt.s32.totalorder %s944_s29, %s940_s22 }
  0x6f   : > { %p942_p13 = pnand %p941_p12, %p1078_p4  ;;  %p947_p3 = por %p946_p2, %p945_p1 }
  0x71   : > { %710 = vperm.xlu0 %922, %v707_v14   ;;  %718 = vperm.xlu1 %923, %v715_v15   ;;  %p943_p0 = pneg %p942_p13 }
  0x73   : > { %p948_p5 = pnand %p947_p3, %p943_p0 }
  0x8d   : > { %v322_v38 = vpop.permute.xlu2 %321 }
  0x94   : > { %v226_v39 = vpop.permute.xlu0 %225  ;;  %v230_v41 = vpop.permute.xlu1 %229 }
  0x95   : > { %v324_v40 = vpop.permute.xlu2 %323 }
  0x96   : > { %v327_v42 = vsel %vm325_vm2, %v322_v38, %v324_v40  ;;  %v848_v40 = vld [vmem:[%s1228_s1 + $0x20] sm:$0xf] }
  0x97   : > { %v335_v46 = vsel %vm238_vm0, %v327_v42, 0 }
  0x9c   : > { %v228_v43 = vpop.permute.xlu0 %227 }
  0x9d   : > { %v232_v44 = vsel %vm231_vm3, %v226_v39, %v228_v43  ;;  %v233_v45 = vsel %vm231_vm3, %v228_v43, %v230_v41  ;;  %v381_v53 = vpop.permute.xlu2 %380 }
  0x9e   : > { %v240_v47 = vsel %vm238_vm0, %v232_v44, 0  ;;  %v243_v48 = vsel %vm238_vm0, %v233_v45, 0 }
  0x9f   : > { %252 = vmatpush.bf16.msra.mxu0 %v240_v47  ;;  %265 = vmatpush.bf16.msra.mxu1 %v243_v48 }
  0xa2   : > { %826 = vmatmul.msk.bf16.vlgmr.msra.gmra.mxu0 %vm234_vm1, %v825_v49  ;;  %827 = vmatmul.msk.bf16.vlgmr.msra.gmra.mxu1 %vm234_vm1, %v825_v49 }
  0xa3   : > { %357 = vmatpush.bf16.msrb.mxu1 %v335_v46 }
  0xa5   : > { %v320_v50 = vpop.permute.xlu1 %319  ;;  %v438_v62 = vpop.permute.xlu2 %437 }
  0xa6   : > { %v326_v51 = vsel %vm325_vm2, %v320_v50, %v322_v38 }
  0xa7   : > { %v332_v52 = vsel %vm238_vm0, %v326_v51, 0 }
  0xa8   : > { %344 = vmatpush.bf16.msrb.mxu0 %v332_v52 }
  0xad   : > { %v495_v5 = vpop.permute.xlu2 %494 }
  0xae   : > { %v379_v54 = vpop.permute.xlu1 %378 }
  0xaf   : > { %v377_v55 = vpop.permute.xlu0 %376  ;;  %v384_v56 = vsel %vm382_vm4, %v379_v54, %v381_v53 }
  0xb0   : > { %v383_v58 = vsel %vm382_vm4, %v377_v55, %v379_v54  ;;  %v392_v59 = vsel %vm238_vm0, %v384_v56, 0 }
  0xb1   : > { %v389_v60 = vsel %vm238_vm0, %v383_v58, 0  ;;  %414 = vmatpush.bf16.msrb.mxu3 %v392_v59 }
  0xb2   : > { %401 = vmatpush.bf16.msrb.mxu2 %v389_v60  ;;  %831 = vmatmul.msk.bf16.vlgmr.msrb.gmra.mxu0 %vm234_vm1, %v830_v57  ;;  %v291_v41 = vpop.f32.mrf.mxu2  ;;  %v304_v42 = vpop.f32.mrf.mxu3 }
  0xb3   : > { %832 = vmatmul.msk.bf16.vlgmr.msrb.gmra.mxu1 %vm234_vm1, %v830_v57 }
  0xb4   : > { %835 = vmatmul.msk.bf16.vlgmr.msrb.gmra.mxu3 %vm234_vm1, %v833_v61 }
  0xb5   : > { %834 = vmatmul.msk.bf16.vlgmr.msrb.gmra.mxu2 %vm234_vm1, %v833_v61  ;;  %v552_v17 = vpop.permute.xlu2 %551 }
  0xb7   : > { %v436_v63 = vpop.permute.xlu1 %435 }
  0xb8   : > { %v441_v0 = vsel %vm439_vm5, %v436_v63, %v438_v62  ;;  %v434_v1 = vpop.permute.xlu0 %433 }
  0xb9   : > { %v449_v2 = vsel %vm238_vm0, %v441_v0, 0  ;;  %v440_v3 = vsel %vm439_vm5, %v434_v1, %v436_v63 }
  0xba   : > { %v446_v4 = vsel %vm238_vm0, %v440_v3, 0  ;;  %471 = vmatpush.bf16.msra.mxu1 %v449_v2  ;;  %v293_v43 = vpop.f32.mrf.mxu2  ;;  %v306_v44 = vpop.f32.mrf.mxu3 }
  0xbb   : > { %458 = vmatpush.bf16.msra.mxu0 %v446_v4 }
  0xbd   : > { %v609_v25 = vpop.permute.xlu2 %608 }
  0xc0   : > { %v493_v7 = vpop.permute.xlu1 %492 }
  0xc1   : > { %v498_v8 = vsel %vm496_vm6, %v493_v7, %v495_v5  ;;  %v491_v9 = vpop.permute.xlu0 %490 }
  0xc2   : > { %v506_v10 = vsel %vm238_vm0, %v498_v8, 0  ;;  %v497_v11 = vsel %vm496_vm6, %v491_v9, %v493_v7  ;;  %837 = vmatmul.msk.bf16.vlgmr.msra.gmra.mxu0 %vm234_vm1, %v836_v6 }
  0xc3   : > { %v503_v12 = vsel %vm238_vm0, %v497_v11, 0  ;;  %528 = vmatpush.bf16.msra.mxu3 %v506_v10  ;;  %838 = vmatmul.msk.bf16.vlgmr.msra.gmra.mxu1 %vm234_vm1, %v836_v6 }
  0xc4   : > { %515 = vmatpush.bf16.msra.mxu2 %v503_v12 }
  0xc5   : > { %v666_v33 = vpop.permute.xlu2 %665 }
  0xc6   : > { %841 = vmatmul.msk.bf16.vlgmr.msra.gmra.mxu3 %vm234_vm1, %v839_v13 }
  0xc7   : > { %840 = vmatmul.msk.bf16.vlgmr.msra.gmra.mxu2 %vm234_vm1, %v839_v13 }
  0xc9   : > { %v550_v18 = vpop.permute.xlu1 %549 }
  0xca   : > { %v555_v19 = vsel %vm553_vm7, %v550_v18, %v552_v17  ;;  %v548_v20 = vpop.permute.xlu0 %547 }
  0xcb   : > { %v563_v21 = vsel %vm238_vm0, %v555_v19, 0  ;;  %v554_v22 = vsel %vm553_vm7, %v548_v20, %v550_v18 }
  0xcc   : > { %v560_v23 = vsel %vm238_vm0, %v554_v22, 0  ;;  %585 = vmatpush.bf16.msrb.mxu1 %v563_v21 }
  0xcd   : > { %572 = vmatpush.bf16.msrb.mxu0 %v560_v23 }
  0xd2   : > { %v607_v26 = vpop.permute.xlu1 %606  ;;  %843 = vmatmul.msk.bf16.vlgmr.msrb.gmra.mxu0 %vm234_vm1, %v842_v24 }
  0xd3   : > { %v612_v27 = vsel %vm610_vm8, %v607_v26, %v609_v25  ;;  %v605_v28 = vpop.permute.xlu0 %604  ;;  %844 = vmatmul.msk.bf16.vlgmr.msrb.gmra.mxu1 %vm234_vm1, %v842_v24 }
  0xd4   : > { %v620_v29 = vsel %vm238_vm0, %v612_v27, 0  ;;  %v611_v30 = vsel %vm610_vm8, %v605_v28, %v607_v26 }
  0xd5   : > { %v617_v31 = vsel %vm238_vm0, %v611_v30, 0  ;;  %642 = vmatpush.bf16.msrb.mxu3 %v620_v29 }
  0xd6   : > { %629 = vmatpush.bf16.msrb.mxu2 %v617_v31 }
  0xd8   : > { %847 = vmatmul.msk.bf16.vlgmr.msrb.gmra.mxu3 %vm234_vm1, %v845_v32 }
  0xd9   : > { %846 = vmatmul.msk.bf16.vlgmr.msrb.gmra.mxu2 %vm234_vm1, %v845_v32 }
  0xdb   : > { %v664_v34 = vpop.permute.xlu1 %663  ;;  %v662_v35 = vpop.permute.xlu0 %661 }
  0xdc   : > { %v669_v36 = vsel %vm667_vm9, %v664_v34, %v666_v33  ;;  %v668_v37 = vsel %vm667_vm9, %v662_v35, %v664_v34 }
  0xdd   : > { %v677_v38 = vsel %vm238_vm0, %v669_v36, 0  ;;  %v674_v39 = vsel %vm238_vm0, %v668_v37, 0 }
  0xde   : > { %686 = vmatpush.bf16.msra.mxu0 %v674_v39  ;;  %699 = vmatpush.bf16.msra.mxu1 %v677_v38 }
  0xe2   : > { %849 = vmatmul.msk.bf16.vlgmr.msra.gmra.mxu0 %vm234_vm1, %v848_v40 }
  0xe3   : > { %850 = vmatmul.msk.bf16.vlgmr.msra.gmra.mxu1 %vm234_vm1, %v848_v40  ;;  %v711_v22 = vpop.permute.xlu0 %710  ;;  %v719_v26 = vpop.permute.xlu1 %718 }
 0x11f   : > { %v254_v45 = vpop.f32.mrf.mxu0  ;;  %v267_v46 = vpop.f32.mrf.mxu1 }
 0x120   : > { %v292_v2 = vadd.f32 %v291_v41, %v254_v45  ;;  %v305_v4 = vadd.f32 %v304_v42, %v267_v46 }
 0x127   : > { %v256_v47 = vpop.f32.mrf.mxu0  ;;  %v269_v48 = vpop.f32.mrf.mxu1 }
 0x12f   : > { %v346_v49 = vpop.f32.mrf.mxu0 }
 0x130   : > { %v359_v50 = vpop.f32.mrf.mxu1  ;;  %v363_v5 = vadd.f32 %v346_v49, %v292_v2 }
 0x131   : > { %v364_v6 = vadd.f32 %v359_v50, %v305_v4 }
 0x137   : > { %v416_v51 = vpop.f32.mrf.mxu3  ;;  %v348_v52 = vpop.f32.mrf.mxu0 }
 0x138   : > { %v403_v53 = vpop.f32.mrf.mxu2  ;;  %v361_v54 = vpop.f32.mrf.mxu1  ;;  %v421_v8 = vadd.f32 %v416_v51, %v364_v6 }
 0x139   : > { %v420_v7 = vadd.f32 %v403_v53, %v363_v5 }
 0x13f   : > { %v418_v55 = vpop.f32.mrf.mxu3  ;;  %v460_v56 = vpop.f32.mrf.mxu0 }
 0x140   : > { %v405_v57 = vpop.f32.mrf.mxu2  ;;  %v473_v58 = vpop.f32.mrf.mxu1  ;;  %v477_v10 = vadd.f32 %v460_v56, %v420_v7 }
 0x141   : > { %v478_v12 = vadd.f32 %v473_v58, %v421_v8 }
 0x147   : > { %v462_v59 = vpop.f32.mrf.mxu0 }
 0x148   : > { %v475_v60 = vpop.f32.mrf.mxu1 }
 0x149   : > { %v530_v61 = vpop.f32.mrf.mxu3 }
 0x14a   : > { %v517_v62 = vpop.f32.mrf.mxu2  ;;  %v535_v14 = vadd.f32 %v530_v61, %v478_v12 }
 0x14b   : > { %v534_v13 = vadd.f32 %v517_v62, %v477_v10 }
 0x14f   : > { %v574_v63 = vpop.f32.mrf.mxu0 }
 0x150   : > { %v587_v0 = vpop.f32.mrf.mxu1  ;;  %v591_v16 = vadd.f32 %v574_v63, %v534_v13 }
 0x151   : > { %v532_v1 = vpop.f32.mrf.mxu3  ;;  %v592_v18 = vadd.f32 %v587_v0, %v535_v14 }
 0x152   : > { %v519_v3 = vpop.f32.mrf.mxu2 }
 0x157   : > { %v576_v9 = vpop.f32.mrf.mxu0 }
 0x158   : > { %v589_v11 = vpop.f32.mrf.mxu1 }
 0x15b   : > { %v644_v15 = vpop.f32.mrf.mxu3 }
 0x15c   : > { %v631_v17 = vpop.f32.mrf.mxu2  ;;  %v649_v20 = vadd.f32 %v644_v15, %v592_v18 }
 0x15d   : > { %v648_v19 = vadd.f32 %v631_v17, %v591_v16 }
 0x15f   : > { %v688_v21 = vpop.f32.mrf.mxu0 }
 0x160   : > { %v705_v23 = vadd.f32 %v688_v21, %v648_v19  ;;  %v701_v24 = vpop.f32.mrf.mxu1 }
 0x161   : > { %v706_v25 = vadd.f32 %v701_v24, %v649_v20 }
 0x162   : > { %v713_v27 = vmul.f32 %v711_v22, %v705_v23 }
 0x163   : > { %v714_v28 = vmul.f32 %v711_v22, %v706_v25  ;;  %v646_v29 = vpop.f32.mrf.mxu3 }
 0x164   : > { %v633_v30 = vpop.f32.mrf.mxu2  ;;  %v721_v31 = vadd.f32 %v719_v26, %v713_v27 }
 0x165   : > { %v722_v32 = vadd.f32 %v719_v26, %v714_v28 }
 0x166   : > { %v723_v33 = vmax.f32 %v721_v31, 0.0 }
 0x167   : > { %v724_v34 = vmax.f32 %v722_v32, 0.0  ;;  %v690_v35 = vpop.f32.mrf.mxu0 }
 0x168   : > { %v725_v36 = vmin.f32 %v723_v33, 6.0  ;;  %v703_v37 = vpop.f32.mrf.mxu1 }
 0x169   : > { %v726_v38 = vmin.f32 %v724_v34, 6.0 }
 0x16a   : > { %727 = vst [vmem:[%s204_s12] sm:$0xff] %v725_v36 }
 0x16b   : > { %728 = vst [vmem:[%s204_s12 + $0x8] sm:$0xff] %v726_v38 }
 0x16c   : > { %951 = shalt.err (!%p948_p5)
}
 0x16d   : > { %858 = dma.vmem_to_hbm [thread:$0]  (%p1078_p4), %s746_s13, 256, %s748_s14, %s730_s18  }
 0x16e PF: > { %p864_p6 = scmp.ge.s32.totalorder %s1002_s20, 2  ;;  %s759_s6 = sand.u32 1, %s982_s15  }
 0x16f   : > { %s760_s7 = scalar_lea.sflag [#allocation3], %s759_s6 }
 0x170   : > { %p861_p7 = pnand %p864_p6, %p1085_p8 }
 0x172   : > { %p862_p9 = pneg %p861_p7 }
 0x174   : > { %977 = dma.done.wait (%p862_p9), %s760_s7, 256  }
 0x175   : > { %979 = vsyncadd (%p862_p9), %s760_s7, 4294967040  ;;  %s17_s20 = sadd.s32 1, %s1002_s20   ;;  %s1234_s15 = smov %s986_s16 }
 0x176   : > { %p14_p10 = scmp.ge.s32.totalorder %s17_s20, 4   ;;  %s1235_s16 = smov %s990_s17 }
 0x177   : > { %s1236_s17 = smov %s1091_s28  ;;  %s1237_s18 = smov %s998_s19 }
 0x178   : > { %s1238_s19 = smov %s1240_s23  ;;  %16 = sbr.rel (!%p14_p10) target bundleno = 4 (0x4), region = 79 }
 0x17d   :  { %766 = vsyncpa [#allocation3], 1 }
 0x17e   :  { %768 = vsyncpa [#allocation3 + $0x1], 1 }

</bundles_post_ra>
